<compile_context>
chip_gen: v5e
topology: v5e:2x2
jax: 0.10.0
libtpu: 0.0.40
codegen_flags: <defaults>
</compile_context>

<pallas_src>
import functools

import numpy as np
import jax
import jax.numpy as jnp
from jax.experimental import pallas as pl
from jax.experimental.pallas import tpu as pltpu


def _round_up(x, m):
    return (x + m - 1) // m * m


def _cdiv(a, b):
    return -(-a // b)


# =====================================================================
# Pallas kernel: fused diff -> bf16 DFT matmul -> |.| -> global sum
# =====================================================================

def _fft_loss_kernel(x_ref, y_ref, k_ref, o_ref, *, hw_out):
    """One batch-tile of the FFT loss.

    x_ref, y_ref : (TB, HW_in)        flattened input / target rows (f32)
    k_ref        : (HW_in, 2*HW_out)  [Re | Im] Kronecker DFT weight (bf16)
    o_ref        : (8, 128)           this core's accumulator block (f32);
                                      every element holds the same partial sum.
    """
    i = pl.program_id(1)              # batch-tile step for this core

    @pl.when(i == 0)
    def _init():
        o_ref[...] = jnp.zeros_like(o_ref)

    # diff once (linearity of the DFT), cast to bf16 so the MXU runs at native
    # rate; one lane-dense matmul yields real | imag spectrum halves.
    d = (x_ref[...] - y_ref[...]).astype(jnp.bfloat16)                 # (TB, HW_in)
    yri = jnp.dot(d, k_ref[...], preferred_element_type=jnp.float32)  # (TB, 2*HW_out)
    yr = yri[:, :hw_out]         # hw_out is a multiple of 128 -> aligned slices
    yi = yri[:, hw_out:]
    mag = jnp.sqrt(yr * yr + yi * yi)                                  # |fft2(d)|

    # lanes first (XLU), then sublanes; broadcast-add the scalar partial into
    # the whole (8,128) accumulator block (keeps the output store unmasked).
    tile_sum = jnp.sum(jnp.sum(mag, axis=1, keepdims=True), axis=0, keepdims=True)
    o_ref[...] += tile_sum


# =====================================================================
# DFT-as-matmul weight (host-built, cached per shape)
# =====================================================================

@functools.lru_cache(maxsize=None)
def _dft2_matmul_weight(h, w):
    """K = [Re(F_H (x) F_W) | Im(F_H (x) F_W)] as a lane-padded bf16 weight.

    For a row-major flattened real image d (index h*W + w), d @ (F_H (x) F_W)
    reproduces fft2 over the last two axes (DFT matrices are symmetric).
    Returns (K, hw_in, hw_out):
      hw_in  = h*w rounded up to a multiple of 8    (contraction dim)
      hw_out = h*w rounded up to a multiple of 128  (lane-aligned Re/Im split)
    Padding rows/columns are zero -> zero contribution / zero magnitude.
    """
    hw = h * w
    hw_in = _round_up(hw, 8)
    hw_out = _round_up(hw, 128)

    def dft(n):
        idx = np.arange(n, dtype=np.float64)
        theta = (2.0 * np.pi / n) * np.outer(idx, idx)
        return np.cos(theta), -np.sin(theta)

    ahr, ahi = dft(h)                          # F_H = ahr + i*ahi
    awr, awi = dft(w)                          # F_W = awr + i*awi
    kr = np.kron(ahr, awr) - np.kron(ahi, awi)
    ki = np.kron(ahr, awi) + np.kron(ahi, awr)

    k = np.zeros((hw_in, 2 * hw_out), np.float32)
    k[:hw, :hw] = kr
    k[:hw, hw_out:hw_out + hw] = ki
    return jnp.asarray(k, dtype=jnp.bfloat16), hw_in, hw_out


# =====================================================================
# Wrapper: tiling, dual-core split, pallas_call
# =====================================================================

_VMEM_BUDGET = 24 << 20      # per-step working-set target; safe on v7x's 64 MiB


def fft_loss(x, target, *, block_rows=2048):
    """Pallas FFTLoss: mean(abs(fft2(x) - fft2(target))) over the last two dims."""
    assert x.shape == target.shape and x.ndim >= 2
    *lead, h, w = x.shape
    b = int(np.prod(lead)) if lead else 1
    hw = h * w

    k, hw_in, hw_out = _dft2_matmul_weight(h, w)
    k_bytes = int(k.size) * 2                                   # bf16

    xf = x.reshape(b, hw).astype(jnp.float32)
    yf = target.reshape(b, hw).astype(jnp.float32)
    if hw_in != hw:                                             # K rows there are zero
        xf = jnp.pad(xf, ((0, 0), (0, hw_in - hw)))
        yf = jnp.pad(yf, ((0, 0), (0, hw_in - hw)))

    # Batch tile: as large as possible while the per-step working set
    # (double-buffered f32 inputs + bf16 diff + f32 yri/mag + K) stays under
    # budget -> fits v7x's 64 MiB VMEM and amortizes the ~0.35 us/step overhead.
    bytes_per_row = (2 * 2 * hw_in * 4      # x, y (double-buffered, f32)
                     + 2 * hw_in            # bf16 diff
                     + 3 * 2 * hw_out * 4)  # yri + mag intermediates (f32)
    tb_cap = max(8, int((_VMEM_BUDGET - 2 * k_bytes) // bytes_per_row))
    tb = min(block_rows, tb_cap, _round_up(b, 8))
    tb = max(8, (tb // 8) * 8)

    # Split batch tiles across TensorCores (2 on v7x; harmless on v5e/v6e).
    n_tiles = _cdiv(b, tb)
    n_cores = 2 if n_tiles >= 2 else 1
    steps = _cdiv(n_tiles, n_cores)
    b_pad = n_cores * steps * tb
    if b_pad != b:                                              # zero rows -> zero spectrum
        xf = jnp.pad(xf, ((0, b_pad - b), (0, 0)))
        yf = jnp.pad(yf, ((0, b_pad - b), (0, 0)))

    cost = pl.CostEstimate(
        flops=2 * b_pad * hw_in * 2 * hw_out,
        transcendentals=b_pad * hw_out,
        bytes_accessed=2 * b_pad * hw_in * 4 + k_bytes + n_cores * 8 * 128 * 4,
    )

    out = pl.pallas_call(
        functools.partial(_fft_loss_kernel, hw_out=hw_out),
        out_shape=jax.ShapeDtypeStruct((8 * n_cores, 128), jnp.float32),
        grid=(n_cores, steps),
        in_specs=[
            pl.BlockSpec((tb, hw_in), lambda c, i: (c * steps + i, 0)),
            pl.BlockSpec((tb, hw_in), lambda c, i: (c * steps + i, 0)),
            pl.BlockSpec((hw_in, 2 * hw_out), lambda c, i: (0, 0)),   # VMEM-resident
        ],
        out_specs=pl.BlockSpec((8, 128), lambda c, i: (c, 0)),
        compiler_params=pltpu.CompilerParams(
            dimension_semantics=("parallel", "arbitrary"),
            vmem_limit_bytes=48 << 20),
        cost_estimate=cost,
    )(xf, yf, k)

    # Every element of a core's (8,128) block holds that core's partial sum.
    partials = out.reshape(n_cores, 8, 128)[:, 0, 0]
    return jnp.sum(partials) / (b * hw)


# =====================================================================
# Main
# =====================================================================

if __name__ == "__main__":
    key = jax.random.PRNGKey(0)
    kx, ky = jax.random.split(key)

    n, c, h, w = 2, 4, 16, 16
    x = jax.random.normal(kx, (n, c, h, w), jnp.float32)
    y = jax.random.normal(ky, (n, c, h, w), jnp.float32)

    loss = jax.block_until_ready(fft_loss(x, y))

    # Pure-JAX reference with the same semantics as the torch module.
    ref = jax.block_until_ready(jnp.mean(jnp.abs(jnp.fft.fft2(x) - jnp.fft.fft2(y))))

    assert loss.shape == ()
    assert bool(jnp.isfinite(loss))
    rel_err = abs(float(loss) - float(ref)) / max(abs(float(ref)), 1e-12)
    assert rel_err < 1e-2, (float(loss), float(ref), rel_err)

    print("KERNEL_OK")
</pallas_src>

<mosaic_0001>
module attributes {stable_mosaic.version = 11 : i64} {
  func.func @_fft_loss_kernel(%arg0: i32, %arg1: i32, %arg2: memref<8x256xf32, #tpu.memory_space<vmem>>, %arg3: memref<8x256xf32, #tpu.memory_space<vmem>>, %arg4: memref<256x512xbf16, #tpu.memory_space<vmem>>, %arg5: memref<8x128xf32, #tpu.memory_space<vmem>>) attributes {dimension_semantics = [#tpu.dimension_semantics<parallel>, #tpu.dimension_semantics<arbitrary>], iteration_bounds = array<i64: 1, 1>, scalar_prefetch = 0 : i64, scratch_operands = 0 : i64, tpu.core_type = #tpu.core_type<tc>, window_params = [{transform_indices = @transform_0, window_bounds = array<i64: 8, 256>}, {transform_indices = @transform_1, window_bounds = array<i64: 8, 256>}, {pipeline_mode = #tpu.pipeline_mode<synchronous>, transform_indices = @transform_2, window_bounds = array<i64: 256, 512>}, {transform_indices = @transform_3, window_bounds = array<i64: 8, 128>}]} {
    %c0_i32 = arith.constant 0 : i32
    %0 = arith.cmpi eq, %arg1, %c0_i32 : i32
    %1 = arith.extui %0 : i1 to i32
    %c0_i32_0 = arith.constant 0 : i32
    %2 = arith.cmpi ne, %1, %c0_i32_0 : i32
    scf.if %2 {
      %cst_12 = arith.constant 0.000000e+00 : f32
      %23 = vector.broadcast %cst_12 : f32 to vector<8x128xf32>
      %c0_13 = arith.constant 0 : index
      %c0_14 = arith.constant 0 : index
      %24 = vector.load %arg5[%c0_13, %c0_14] : memref<8x128xf32, #tpu.memory_space<vmem>>, vector<8x128xf32>
      tpu.vector_store %arg5[%c0_13, %c0_14], %23 {strides = array<i32>} : memref<8x128xf32, #tpu.memory_space<vmem>>, vector<8x128xf32>,
    } else {
    }
    %c0 = arith.constant 0 : index
    %c0_1 = arith.constant 0 : index
    %3 = vector.load %arg2[%c0, %c0_1] : memref<8x256xf32, #tpu.memory_space<vmem>>, vector<8x256xf32>
    %c0_2 = arith.constant 0 : index
    %c0_3 = arith.constant 0 : index
    %4 = vector.load %arg3[%c0_2, %c0_3] : memref<8x256xf32, #tpu.memory_space<vmem>>, vector<8x256xf32>
    %5 = arith.subf %3, %4 : vector<8x256xf32>
    %6 = arith.truncf %5 : vector<8x256xf32> to vector<8x256xbf16>
    %c0_4 = arith.constant 0 : index
    %c0_5 = arith.constant 0 : index
    %7 = vector.load %arg4[%c0_4, %c0_5] : memref<256x512xbf16, #tpu.memory_space<vmem>>, vector<256x512xbf16>
    %cst = arith.constant dense<0.000000e+00> : vector<8x512xf32>
    %8 = tpu.matmul %6, %7, %cst {dimension_numbers = #tpu.dot_dimension_numbers<[1], [0], [0], [1], [0, 0, 1, 1], [], []>} : vector<8x256xbf16>, vector<256x512xbf16>, vector<8x512xf32> -> vector<8x512xf32>
    %9 = vector.extract_strided_slice %8 {offsets = [0, 0], sizes = [8, 256], strides = [1, 1]} : vector<8x512xf32> to vector<8x256xf32>
    %10 = vector.extract_strided_slice %8 {offsets = [0, 256], sizes = [8, 256], strides = [1, 1]} : vector<8x512xf32> to vector<8x256xf32>
    %11 = arith.mulf %9, %9 : vector<8x256xf32>
    %12 = arith.mulf %10, %10 : vector<8x256xf32>
    %13 = arith.addf %11, %12 : vector<8x256xf32>
    %14 = math.sqrt %13 : vector<8x256xf32>
    %cst_6 = arith.constant dense<0.000000e+00> : vector<8xf32>
    %15 = vector.multi_reduction <add>, %14, %cst_6 [1] : vector<8x256xf32> to vector<8xf32>
    %16 = vector.shape_cast %15 : vector<8xf32> to vector<8x1xf32>
    %cst_7 = arith.constant dense<0.000000e+00> : vector<1xf32>
    %17 = vector.multi_reduction <add>, %16, %cst_7 [0] : vector<8x1xf32> to vector<1xf32>
    %18 = vector.shape_cast %17 : vector<1xf32> to vector<1x1xf32>
    %c0_8 = arith.constant 0 : index
    %c0_9 = arith.constant 0 : index
    %19 = vector.load %arg5[%c0_8, %c0_9] : memref<8x128xf32, #tpu.memory_space<vmem>>, vector<8x128xf32>
    %20 = vector.broadcast %18 : vector<1x1xf32> to vector<8x128xf32>
    %21 = arith.addf %19, %20 : vector<8x128xf32>
    %c0_10 = arith.constant 0 : index
    %c0_11 = arith.constant 0 : index
    %22 = vector.load %arg5[%c0_10, %c0_11] : memref<8x128xf32, #tpu.memory_space<vmem>>, vector<8x128xf32>
    tpu.vector_store %arg5[%c0_10, %c0_11], %21 {strides = array<i32>} : memref<8x128xf32, #tpu.memory_space<vmem>>, vector<8x128xf32>,
    return
  }
  func.func @transform_0(%arg0: i32, %arg1: i32) -> (i32, i32) {
    %c1_i32 = arith.constant 1 : i32
    %0 = arith.muli %arg0, %c1_i32 : i32
    %1 = arith.addi %0, %arg1 : i32
    %c0_i32 = arith.constant 0 : i32
    %c0_i32_0 = arith.constant 0 : i32
    return %1, %c0_i32 : i32, i32
  }
  func.func @transform_1(%arg0: i32, %arg1: i32) -> (i32, i32) {
    %c1_i32 = arith.constant 1 : i32
    %0 = arith.muli %arg0, %c1_i32 : i32
    %1 = arith.addi %0, %arg1 : i32
    %c0_i32 = arith.constant 0 : i32
    %c0_i32_0 = arith.constant 0 : i32
    return %1, %c0_i32 : i32, i32
  }
  func.func @transform_2(%arg0: i32, %arg1: i32) -> (i32, i32) {
    %c0_i32 = arith.constant 0 : i32
    %c0_i32_0 = arith.constant 0 : i32
    %c0_i32_1 = arith.constant 0 : i32
    return %c0_i32, %c0_i32_0 : i32, i32
  }
  func.func @transform_3(%arg0: i32, %arg1: i32) -> (i32, i32) {
    %c0_i32 = arith.constant 0 : i32
    %c0_i32_0 = arith.constant 0 : i32
    return %arg0, %c0_i32 : i32, i32
  }
}

</mosaic_0001>

<bundles_post_ra>
// kernel: tpu_custom_call.1
= control target key start
LH: loop header
LB: loop body
LE: loop exit
PB: predicated region body
PF: predicated region fallthrough
CT: control target
= control target key end

     0   :  { %8 = vsyncpa [#allocation3], 0  ;;  %s1112_s0 = inlined_call_operand.hbm [shape: f32[8,256], index: 0, kind: input, shape index: {}]   ;;  %s1113_s1 = inlined_call_operand.hbm [shape: f32[8,256], index: 1, kind: input, shape index: {}]   ;;  %s1114_s2 = inlined_call_operand.hbm [shape: bf16[256,512], index: 2, kind: input, shape index: {}]   ;;  %s1115_s3 = inlined_call_operand.hbm [shape: f32[8,128], index: 3, kind: output, shape index: {}]  }
   0x1   :  { %9 = vsyncpa [#allocation6], 0  ;;  %s35_s14 = sshll.u32 %s1113_s1, 4  ;;  %s36_s14 = int_to_ptr.hbm [resolvable:$true] %s35_s14 }
   0x2   :  { %10 = vsyncpa [#allocation4], 0  ;;  %s1062_s15 = smov [#allocation5]   ;;  %s20_s19 = sshll.u32 %s1112_s0, 4  ;;  %s21_s19 = int_to_ptr.hbm [resolvable:$true] %s20_s19 }
   0x3   :  { %s37_s16 = sshll.u32 %s1062_s15, 4  ;;  %s1063_s20 = smov [#allocation2]   ;;  %s38_s16 = int_to_ptr.vmem [resolvable:$true] %s37_s16 }
   0x4   :  { %40 = dma.hbm_to_vmem [thread:$0]  %s36_s14, 256, %s38_s16, [#allocation6]  }
   0x5   :  { %s22_s21 = sshll.u32 %s1063_s20, 4  ;;  %s45_s24 = sshll.u32 %s1114_s2, 4  ;;  %s23_s21 = int_to_ptr.vmem [resolvable:$true] %s22_s21  ;;  %s46_s24 = int_to_ptr.hbm [resolvable:$true] %s45_s24 }
   0x6   :  { %25 = dma.hbm_to_vmem [thread:$0]  %s21_s19, 256, %s23_s21, [#allocation3]  }
   0x7   :  { %s1064_s1 = smov [#allocation7]   ;;  %s1065_s26 = smov 256  }
   0x8   :  { %s47_s25 = sshll.u32 %s1064_s1, 4  ;;  %s1066_s27 = smov 16   ;;  %s48_s25 = int_to_ptr.vmem [resolvable:$true] %s47_s25 }
   0x9   :  { %53 = dma.hbm_to_vmem [thread:$0]  %s46_s24, 8192, %s48_s25, [#allocation6], %s1065_s26, %s1065_s26, %s1066_s27  }
   0xa   :  { %1056 = dma.done.wait [#allocation3], 256  }
   0xb   :  { %1057 = vsyncadd [#allocation3], 4294967040 }
   0xc   :  { %1058 = dma.done.wait [#allocation6], 8448  }
   0xd   :  { %1059 = vsyncadd [#allocation6], 4294958848  ;;  %v743_v0 = vld [vmem:[#allocation7 + $0xe0] sm:$0xf]  ;;  %v915_v1 = vld [vmem:[#allocation7 + $0xec] sm:$0xf0] }
   0xe   :  { %v871_v2 = vld [vmem:[#allocation7 + $0x1e0] sm:$0xf]  ;;  %v744_v3 = vor.u32 %v915_v1, %v743_v0  ;;  %v947_v4 = vld [vmem:[#allocation7 + $0x1ec] sm:$0xf0]  ;;  %v913_v5 = vld [vmem:[#allocation7 + $0xe4] sm:$0xf] }
   0xf   :  { %v745_v6 = vld [vmem:[#allocation7 + $0xf0] sm:$0xf0]  ;;  %v872_v7 = vor.u32 %v947_v4, %v871_v2  ;;  %v945_v9 = vld [vmem:[#allocation7 + $0x1e4] sm:$0xf]  ;;  %v727_v11 = vld [vmem:[#allocation7 + $0xc0] sm:$0xf] }
  0x10   :  { %v748_v8 = vor.u32 %v913_v5, %v745_v6  ;;  %v873_v10 = vld [vmem:[#allocation7 + $0x1f0] sm:$0xf0]  ;;  %465 = vmatpush.bf16.msra.mxu0 %v744_v3  ;;  %v911_v13 = vld [vmem:[#allocation7 + $0xcc] sm:$0xf0]  ;;  %v855_v14 = vld [vmem:[#allocation7 + $0x1c0] sm:$0xf] }
  0x11   :  { %v876_v12 = vor.u32 %v945_v9, %v873_v10  ;;  %v943_v15 = vld [vmem:[#allocation7 + $0x1cc] sm:$0xf0]  ;;  %478 = vmatpush.bf16.msra.mxu1 %v872_v7  ;;  %v728_v16 = vor.u32 %v911_v13, %v727_v11  ;;  %v909_v18 = vld [vmem:[#allocation7 + $0xc4] sm:$0xf]  ;;  %v729_v19 = vld [vmem:[#allocation7 + $0xd0] sm:$0xf0] }
  0x12   :  { %491 = vmatpush.bf16.msra.mxu2 %v748_v8  ;;  %v856_v17 = vor.u32 %v943_v15, %v855_v14  ;;  %v941_v20 = vld [vmem:[#allocation7 + $0x1c4] sm:$0xf]  ;;  %v732_v21 = vor.u32 %v909_v18, %v729_v19  ;;  %v857_v22 = vld [vmem:[#allocation7 + $0x1d0] sm:$0xf0]  ;;  %v711_v23 = vld [vmem:[#allocation7 + $0xa0] sm:$0xf] }
  0x13   :  { %504 = vmatpush.bf16.msra.mxu3 %v876_v12  ;;  %v907_v24 = vld [vmem:[#allocation7 + $0xac] sm:$0xf0]  ;;  %v860_v25 = vor.u32 %v941_v20, %v857_v22  ;;  %v839_v26 = vld [vmem:[#allocation7 + $0x1a0] sm:$0xf]  ;;  %v905_v28 = vld [vmem:[#allocation7 + $0xa4] sm:$0xf] }
  0x14   :  { %v939_v27 = vld [vmem:[#allocation7 + $0x1ac] sm:$0xf0]  ;;  %466 = vmatpush.bf16.msra.mxu0 %v728_v16  ;;  %v712_v29 = vor.u32 %v907_v24, %v711_v23  ;;  %v713_v30 = vld [vmem:[#allocation7 + $0xb0] sm:$0xf0]  ;;  %v937_v31 = vld [vmem:[#allocation7 + $0x1a4] sm:$0xf] }
  0x15   :  { %v841_v32 = vld [vmem:[#allocation7 + $0x1b0] sm:$0xf0]  ;;  %479 = vmatpush.bf16.msra.mxu1 %v856_v17  ;;  %v840_v33 = vor.u32 %v939_v27, %v839_v26  ;;  %v716_v34 = vor.u32 %v905_v28, %v713_v30  ;;  %v695_v35 = vld [vmem:[#allocation7 + $0x80] sm:$0xf]  ;;  %v903_v36 = vld [vmem:[#allocation7 + $0x8c] sm:$0xf0] }
  0x16   :  { %492 = vmatpush.bf16.msra.mxu2 %v732_v21  ;;  %v823_v37 = vld [vmem:[#allocation7 + $0x180] sm:$0xf]  ;;  %v844_v38 = vor.u32 %v937_v31, %v841_v32  ;;  %v935_v39 = vld [vmem:[#allocation7 + $0x18c] sm:$0xf0]  ;;  %v901_v40 = vld [vmem:[#allocation7 + $0x84] sm:$0xf]  ;;  %v696_v44 = vor.u32 %v903_v36, %v695_v35 }
  0x17   :  { %505 = vmatpush.bf16.msra.mxu3 %v860_v25  ;;  %v697_v41 = vld [vmem:[#allocation7 + $0x90] sm:$0xf0]  ;;  %v933_v42 = vld [vmem:[#allocation7 + $0x184] sm:$0xf]  ;;  %v824_v45 = vor.u32 %v935_v39, %v823_v37  ;;  %v679_v47 = vld [vmem:[#allocation7 + $0x60] sm:$0xf] }
  0x18   :  { %v825_v43 = vld [vmem:[#allocation7 + $0x190] sm:$0xf0]  ;;  %467 = vmatpush.bf16.msra.mxu0 %v712_v29  ;;  %v700_v46 = vor.u32 %v901_v40, %v697_v41  ;;  %v899_v48 = vld [vmem:[#allocation7 + $0x6c] sm:$0xf0]  ;;  %v807_v49 = vld [vmem:[#allocation7 + $0x160] sm:$0xf] }
  0x19   :  { %480 = vmatpush.bf16.msra.mxu1 %v840_v33  ;;  %v828_v50 = vor.u32 %v933_v42, %v825_v43  ;;  %v931_v51 = vld [vmem:[#allocation7 + $0x16c] sm:$0xf0]  ;;  %v897_v52 = vld [vmem:[#allocation7 + $0x64] sm:$0xf]  ;;  %v681_v53 = vld [vmem:[#allocation7 + $0x70] sm:$0xf0]  ;;  %v680_v56 = vor.u32 %v899_v48, %v679_v47 }
  0x1a   :  { %493 = vmatpush.bf16.msra.mxu2 %v716_v34  ;;  %v929_v54 = vld [vmem:[#allocation7 + $0x164] sm:$0xf]  ;;  %v809_v55 = vld [vmem:[#allocation7 + $0x170] sm:$0xf0]  ;;  %v808_v57 = vor.u32 %v931_v51, %v807_v49  ;;  %v684_v58 = vor.u32 %v897_v52, %v681_v53  ;;  %v663_v59 = vld [vmem:[#allocation7 + $0x40] sm:$0xf] }
  0x1b   :  { %506 = vmatpush.bf16.msra.mxu3 %v844_v38  ;;  %v895_v60 = vld [vmem:[#allocation7 + $0x4c] sm:$0xf0]  ;;  %v791_v61 = vld [vmem:[#allocation7 + $0x140] sm:$0xf]  ;;  %v812_v62 = vor.u32 %v929_v54, %v809_v55  ;;  %v893_v0 = vld [vmem:[#allocation7 + $0x44] sm:$0xf] }
  0x1c   :  { %468 = vmatpush.bf16.msra.mxu0 %v696_v44  ;;  %v927_v63 = vld [vmem:[#allocation7 + $0x14c] sm:$0xf0]  ;;  %v665_v1 = vld [vmem:[#allocation7 + $0x50] sm:$0xf0]  ;;  %v925_v2 = vld [vmem:[#allocation7 + $0x144] sm:$0xf]  ;;  %v664_v4 = vor.u32 %v895_v60, %v663_v59 }
  0x1d   :  { %481 = vmatpush.bf16.msra.mxu1 %v824_v45  ;;  %v793_v3 = vld [vmem:[#allocation7 + $0x150] sm:$0xf0]  ;;  %v647_v5 = vld [vmem:[#allocation7 + $0x20] sm:$0xf]  ;;  %v891_v6 = vld [vmem:[#allocation7 + $0x2c] sm:$0xf0]  ;;  %v792_v7 = vor.u32 %v927_v63, %v791_v61  ;;  %v668_v8 = vor.u32 %v893_v0, %v665_v1 }
  0x1e   :  { %494 = vmatpush.bf16.msra.mxu2 %v700_v46  ;;  %v775_v9 = vld [vmem:[#allocation7 + $0x120] sm:$0xf]  ;;  %v923_v10 = vld [vmem:[#allocation7 + $0x12c] sm:$0xf0]  ;;  %v889_v11 = vld [vmem:[#allocation7 + $0x24] sm:$0xf]  ;;  %v796_v12 = vor.u32 %v925_v2, %v793_v3  ;;  %v648_v19 = vor.u32 %v891_v6, %v647_v5 }
  0x1f   :  { %507 = vmatpush.bf16.msra.mxu3 %v828_v50  ;;  %v649_v13 = vld [vmem:[#allocation7 + $0x30] sm:$0xf0]  ;;  %v921_v14 = vld [vmem:[#allocation7 + $0x124] sm:$0xf]  ;;  %v631_v16 = vld [vmem:[#allocation7] sm:$0xf]  ;;  %v776_v23 = vor.u32 %v923_v10, %v775_v9 }
  0x20   :  { %469 = vmatpush.bf16.msra.mxu0 %v680_v56  ;;  %v777_v15 = vld [vmem:[#allocation7 + $0x130] sm:$0xf0]  ;;  %v887_v17 = vld [vmem:[#allocation7 + $0xc] sm:$0xf0]  ;;  %v759_v18 = vld [vmem:[#allocation7 + $0x100] sm:$0xf]  ;;  %v652_v24 = vor.u32 %v889_v11, %v649_v13 }
  0x21   :  { %482 = vmatpush.bf16.msra.mxu1 %v808_v57  ;;  %v919_v20 = vld [vmem:[#allocation7 + $0x10c] sm:$0xf0]  ;;  %v885_v21 = vld [vmem:[#allocation7 + $0x4] sm:$0xf]  ;;  %v633_v22 = vld [vmem:[#allocation7 + $0x10] sm:$0xf0]  ;;  %v780_v28 = vor.u32 %v921_v14, %v777_v15  ;;  %v632_v35 = vor.u32 %v887_v17, %v631_v16 }
  0x22   :  { %495 = vmatpush.bf16.msra.mxu2 %v684_v58  ;;  %v917_v25 = vld [vmem:[#allocation7 + $0x104] sm:$0xf]  ;;  %v761_v26 = vld [vmem:[#allocation7 + $0x110] sm:$0xf0]  ;;  %v751_v27 = vld [vmem:[#allocation7 + $0xe8] sm:$0xf]  ;;  %v760_v36 = vor.u32 %v919_v20, %v759_v18  ;;  %v636_v40 = vor.u32 %v885_v21, %v633_v22 }
  0x23   :  { %508 = vmatpush.bf16.msra.mxu3 %v812_v62  ;;  %v916_v29 = vld [vmem:[#allocation7 + $0xf4] sm:$0xf0]  ;;  %v879_v30 = vld [vmem:[#allocation7 + $0x1e8] sm:$0xf]  ;;  %v914_v32 = vld [vmem:[#allocation7 + $0xec] sm:$0xf]  ;;  %v764_v45 = vor.u32 %v917_v25, %v761_v26 }
  0x24   :  { %470 = vmatpush.bf16.msra.mxu0 %v664_v4  ;;  %v948_v31 = vld [vmem:[#allocation7 + $0x1f4] sm:$0xf0]  ;;  %v753_v33 = vld [vmem:[#allocation7 + $0xf8] sm:$0xf0]  ;;  %v73_v34 = vld [vmem:[#allocation2] sm:$0xff]  ;;  %v752_v46 = vor.u32 %v916_v29, %v751_v27  ;;  %s1067_s0 = smov [#allocation8]  }
  0x25   :  { %483 = vmatpush.bf16.msra.mxu1 %v792_v7  ;;  %v75_v37 = vld [vmem:[#allocation5] sm:$0xff]  ;;  %v74_v38 = vld [vmem:[#allocation2 + $0x8] sm:$0xff]  ;;  %v76_v39 = vld [vmem:[#allocation5 + $0x8] sm:$0xff]  ;;  %v880_v47 = vor.u32 %v948_v31, %v879_v30  ;;  %v756_v48 = vor.u32 %v914_v32, %v753_v33  ;;  %s616_s2 = sshll.u32 %s1067_s0, 4  ;;  %s618_s30 = sshll.u32 %s1115_s3, 4  ;;  %s617_s2 = int_to_ptr.vmem [resolvable:$true] %s616_s2  ;;  %s619_s30 = int_to_ptr.hbm [resolvable:$true] %s618_s30 }
  0x26   :  { %496 = vmatpush.bf16.msra.mxu2 %v668_v8  ;;  %v946_v41 = vld [vmem:[#allocation7 + $0x1ec] sm:$0xf]  ;;  %v881_v42 = vld [vmem:[#allocation7 + $0x1f8] sm:$0xf0]  ;;  %v77_v43 = vsub.f32 %v73_v34, %v75_v37  ;;  %v78_v44 = vsub.f32 %v74_v38, %v76_v39  ;;  %v735_v49 = vld [vmem:[#allocation7 + $0xc8] sm:$0xf] }
  0x27   :  { %509 = vmatpush.bf16.msra.mxu3 %v796_v12  ;;  %v912_v50 = vld [vmem:[#allocation7 + $0xd4] sm:$0xf0]  ;;  %v863_v51 = vld [vmem:[#allocation7 + $0x1c8] sm:$0xf]  ;;  %v884_v52 = vor.u32 %v946_v41, %v881_v42  ;;  %v910_v54 = vld [vmem:[#allocation7 + $0xcc] sm:$0xf] }
  0x28   :  { %471 = vmatpush.bf16.msra.mxu0 %v648_v19  ;;  %v944_v53 = vld [vmem:[#allocation7 + $0x1d4] sm:$0xf0]  ;;  %v737_v55 = vld [vmem:[#allocation7 + $0xd8] sm:$0xf0]  ;;  %v1097_v56 = vpack.c.bf16 %v77_v43, %v77_v43  ;;  %v942_v57 = vld [vmem:[#allocation7 + $0x1cc] sm:$0xf]  ;;  %v1099_v59 = vpack.c.bf16 %v78_v44, %v78_v44  ;;  %v736_v60 = vor.u32 %v912_v50, %v735_v49 }
  0x29   :  { %484 = vmatpush.bf16.msra.mxu1 %v776_v23  ;;  %v865_v58 = vld [vmem:[#allocation7 + $0x1d8] sm:$0xf0]  ;;  %v864_v61 = vor.u32 %v944_v53, %v863_v51  ;;  %v740_v62 = vor.u32 %v910_v54, %v737_v55  ;;  %v719_v63 = vld [vmem:[#allocation7 + $0xa8] sm:$0xf]  ;;  %v908_v0 = vld [vmem:[#allocation7 + $0xb4] sm:$0xf0] }
  0x2a   :  { %497 = vmatpush.bf16.msra.mxu2 %v652_v24  ;;  %v847_v1 = vld [vmem:[#allocation7 + $0x1a8] sm:$0xf]  ;;  %v868_v2 = vor.u32 %v942_v57, %v865_v58  ;;  %v940_v3 = vld [vmem:[#allocation7 + $0x1b4] sm:$0xf0]  ;;  %v906_v4 = vld [vmem:[#allocation7 + $0xac] sm:$0xf]  ;;  %v720_v8 = vor.u32 %v908_v0, %v719_v63 }
  0x2b   :  { %510 = vmatpush.bf16.msra.mxu3 %v780_v28  ;;  %v721_v5 = vld [vmem:[#allocation7 + $0xb8] sm:$0xf0]  ;;  %v938_v6 = vld [vmem:[#allocation7 + $0x1ac] sm:$0xf]  ;;  %v848_v9 = vor.u32 %v940_v3, %v847_v1  ;;  %v703_v11 = vld [vmem:[#allocation7 + $0x88] sm:$0xf] }
  0x2c   :  { %472 = vmatpush.bf16.msra.mxu0 %v632_v35  ;;  %v849_v7 = vld [vmem:[#allocation7 + $0x1b8] sm:$0xf0]  ;;  %v724_v10 = vor.u32 %v906_v4, %v721_v5  ;;  %v904_v12 = vld [vmem:[#allocation7 + $0x94] sm:$0xf0]  ;;  %v831_v13 = vld [vmem:[#allocation7 + $0x188] sm:$0xf] }
  0x2d   :  { %485 = vmatpush.bf16.msra.mxu1 %v760_v36  ;;  %v852_v14 = vor.u32 %v938_v6, %v849_v7  ;;  %v936_v15 = vld [vmem:[#allocation7 + $0x194] sm:$0xf0]  ;;  %v902_v16 = vld [vmem:[#allocation7 + $0x8c] sm:$0xf]  ;;  %v705_v17 = vld [vmem:[#allocation7 + $0x98] sm:$0xf0]  ;;  %v704_v20 = vor.u32 %v904_v12, %v703_v11 }
  0x2e   :  { %498 = vmatpush.bf16.msra.mxu2 %v636_v40  ;;  %v934_v18 = vld [vmem:[#allocation7 + $0x18c] sm:$0xf]  ;;  %v833_v19 = vld [vmem:[#allocation7 + $0x198] sm:$0xf0]  ;;  %v832_v21 = vor.u32 %v936_v15, %v831_v13  ;;  %v708_v22 = vor.u32 %v902_v16, %v705_v17  ;;  %v687_v23 = vld [vmem:[#allocation7 + $0x68] sm:$0xf] }
  0x2f   :  { %511 = vmatpush.bf16.msra.mxu3 %v764_v45  ;;  %473 = vmatmul.bf16.vlgmr.msra.gmra.mxu0 %v1097_v56  ;;  %v900_v24 = vld [vmem:[#allocation7 + $0x74] sm:$0xf0]  ;;  %v815_v25 = vld [vmem:[#allocation7 + $0x168] sm:$0xf]  ;;  %v836_v26 = vor.u32 %v934_v18, %v833_v19  ;;  %v898_v28 = vld [vmem:[#allocation7 + $0x6c] sm:$0xf] }
  0x30   :  { %517 = vmatpush.bf16.msrb.mxu0 %v752_v46  ;;  %486 = vmatmul.bf16.vlgmr.msra.gmra.mxu1 %v1099_v59  ;;  %v932_v27 = vld [vmem:[#allocation7 + $0x174] sm:$0xf0]  ;;  %v689_v29 = vld [vmem:[#allocation7 + $0x78] sm:$0xf0]  ;;  %v930_v30 = vld [vmem:[#allocation7 + $0x16c] sm:$0xf]  ;;  %v688_v32 = vor.u32 %v900_v24, %v687_v23 }
  0x31   :  { %530 = vmatpush.bf16.msrb.mxu1 %v880_v47  ;;  %499 = vmatmul.bf16.vlgmr.msra.gmra.mxu2 %v1097_v56  ;;  %v817_v31 = vld [vmem:[#allocation7 + $0x178] sm:$0xf0]  ;;  %v816_v33 = vor.u32 %v932_v27, %v815_v25  ;;  %v692_v34 = vor.u32 %v898_v28, %v689_v29  ;;  %v671_v35 = vld [vmem:[#allocation7 + $0x48] sm:$0xf]  ;;  %v896_v36 = vld [vmem:[#allocation7 + $0x54] sm:$0xf0] }
  0x32   :  { %543 = vmatpush.bf16.msrb.mxu2 %v756_v48  ;;  %512 = vmatmul.bf16.vlgmr.msra.gmra.mxu3 %v1099_v59  ;;  %v799_v37 = vld [vmem:[#allocation7 + $0x148] sm:$0xf]  ;;  %v820_v38 = vor.u32 %v930_v30, %v817_v31  ;;  %v928_v39 = vld [vmem:[#allocation7 + $0x154] sm:$0xf0]  ;;  %v894_v40 = vld [vmem:[#allocation7 + $0x4c] sm:$0xf]  ;;  %v672_v44 = vor.u32 %v896_v36, %v671_v35 }
  0x33   :  { %556 = vmatpush.bf16.msrb.mxu3 %v884_v52  ;;  %v673_v41 = vld [vmem:[#allocation7 + $0x58] sm:$0xf0]  ;;  %v926_v42 = vld [vmem:[#allocation7 + $0x14c] sm:$0xf]  ;;  %v800_v45 = vor.u32 %v928_v39, %v799_v37  ;;  %v655_v47 = vld [vmem:[#allocation7 + $0x28] sm:$0xf] }
  0x34   :  { %518 = vmatpush.bf16.msrb.mxu0 %v736_v60  ;;  %v801_v43 = vld [vmem:[#allocation7 + $0x158] sm:$0xf0]  ;;  %v676_v46 = vor.u32 %v894_v40, %v673_v41  ;;  %v892_v48 = vld [vmem:[#allocation7 + $0x34] sm:$0xf0]  ;;  %v783_v49 = vld [vmem:[#allocation7 + $0x128] sm:$0xf] }
  0x35   :  { %531 = vmatpush.bf16.msrb.mxu1 %v864_v61  ;;  %v804_v50 = vor.u32 %v926_v42, %v801_v43  ;;  %v924_v51 = vld [vmem:[#allocation7 + $0x134] sm:$0xf0]  ;;  %v890_v52 = vld [vmem:[#allocation7 + $0x2c] sm:$0xf]  ;;  %v657_v53 = vld [vmem:[#allocation7 + $0x38] sm:$0xf0]  ;;  %v656_v57 = vor.u32 %v892_v48, %v655_v47 }
  0x36   :  { %544 = vmatpush.bf16.msrb.mxu2 %v740_v62  ;;  %v922_v54 = vld [vmem:[#allocation7 + $0x12c] sm:$0xf]  ;;  %v785_v55 = vld [vmem:[#allocation7 + $0x138] sm:$0xf0]  ;;  %v784_v58 = vor.u32 %v924_v51, %v783_v49  ;;  %v660_v60 = vor.u32 %v890_v52, %v657_v53  ;;  %v639_v61 = vld [vmem:[#allocation7 + $0x8] sm:$0xf] }
  0x37   :  { %557 = vmatpush.bf16.msrb.mxu3 %v868_v2  ;;  %v888_v62 = vld [vmem:[#allocation7 + $0x14] sm:$0xf0]  ;;  %v767_v63 = vld [vmem:[#allocation7 + $0x108] sm:$0xf]  ;;  %v788_v0 = vor.u32 %v922_v54, %v785_v55  ;;  %v886_v2 = vld [vmem:[#allocation7 + $0xc] sm:$0xf] }
  0x38   :  { %519 = vmatpush.bf16.msrb.mxu0 %v720_v8  ;;  %v920_v1 = vld [vmem:[#allocation7 + $0x114] sm:$0xf0]  ;;  %v641_v3 = vld [vmem:[#allocation7 + $0x18] sm:$0xf0]  ;;  %v918_v4 = vld [vmem:[#allocation7 + $0x10c] sm:$0xf]  ;;  %v640_v6 = vor.u32 %v888_v62, %v639_v61 }
  0x39   :  { %532 = vmatpush.bf16.msrb.mxu1 %v848_v9  ;;  %v769_v5 = vld [vmem:[#allocation7 + $0x118] sm:$0xf0]  ;;  %v768_v7 = vor.u32 %v920_v1, %v767_v63  ;;  %v644_v8 = vor.u32 %v886_v2, %v641_v3 }
  0x3a   :  { %545 = vmatpush.bf16.msrb.mxu2 %v724_v10  ;;  %v772_v9 = vor.u32 %v918_v4, %v769_v5 }
  0x3b   :  { %558 = vmatpush.bf16.msrb.mxu3 %v852_v14 }
  0x3c   :  { %520 = vmatpush.bf16.msrb.mxu0 %v704_v20 }
  0x3d   :  { %533 = vmatpush.bf16.msrb.mxu1 %v832_v21 }
  0x3e   :  { %546 = vmatpush.bf16.msrb.mxu2 %v708_v22 }
  0x3f   :  { %559 = vmatpush.bf16.msrb.mxu3 %v836_v26 }
  0x40   :  { %521 = vmatpush.bf16.msrb.mxu0 %v688_v32 }
  0x41   :  { %534 = vmatpush.bf16.msrb.mxu1 %v816_v33 }
  0x42   :  { %547 = vmatpush.bf16.msrb.mxu2 %v692_v34 }
  0x43   :  { %560 = vmatpush.bf16.msrb.mxu3 %v820_v38 }
  0x44   :  { %522 = vmatpush.bf16.msrb.mxu0 %v672_v44 }
  0x45   :  { %535 = vmatpush.bf16.msrb.mxu1 %v800_v45 }
  0x46   :  { %548 = vmatpush.bf16.msrb.mxu2 %v676_v46 }
  0x47   :  { %561 = vmatpush.bf16.msrb.mxu3 %v804_v50 }
  0x48   :  { %523 = vmatpush.bf16.msrb.mxu0 %v656_v57 }
  0x49   :  { %536 = vmatpush.bf16.msrb.mxu1 %v784_v58 }
  0x4a   :  { %549 = vmatpush.bf16.msrb.mxu2 %v660_v60 }
  0x4b   :  { %562 = vmatpush.bf16.msrb.mxu3 %v788_v0 }
  0x4c   :  { %524 = vmatpush.bf16.msrb.mxu0 %v640_v6 }
  0x4d   :  { %537 = vmatpush.bf16.msrb.mxu1 %v768_v7 }
  0x4e   :  { %550 = vmatpush.bf16.msrb.mxu2 %v644_v8 }
  0x4f   :  { %563 = vmatpush.bf16.msrb.mxu3 %v772_v9  ;;  %525 = vmatmul.bf16.vlgmr.msrb.gmra.mxu0 %v1097_v56 }
  0x50   :  { %538 = vmatmul.bf16.vlgmr.msrb.gmra.mxu1 %v1099_v59 }
  0x51   :  { %551 = vmatmul.bf16.vlgmr.msrb.gmra.mxu2 %v1097_v56 }
  0x52   :  { %564 = vmatmul.bf16.vlgmr.msrb.gmra.mxu3 %v1099_v59 }
  0xac   :  { %v474_v10 = vpop.f32.mrf.mxu0 }
  0xad   :  { %v487_v11 = vpop.f32.mrf.mxu1 }
  0xae   :  { %v488_v18 = vadd.f32 %v487_v11, %v474_v10 }
  0xb0   :  { %v569_v22 = vmul.f32 %v488_v18, %v488_v18 }
  0xb4   :  { %v500_v12 = vpop.f32.mrf.mxu2  ;;  %v476_v14 = vpop.f32.mrf.mxu0 }
  0xb5   :  { %v513_v13 = vpop.f32.mrf.mxu3  ;;  %v489_v15 = vpop.f32.mrf.mxu1 }
  0xb6   :  { %v514_v25 = vadd.f32 %v513_v13, %v500_v12 }
  0xb8   :  { %v570_v29 = vmul.f32 %v514_v25, %v514_v25 }
  0xbc   :  { %v502_v16 = vpop.f32.mrf.mxu2 }
  0xbd   :  { %v515_v17 = vpop.f32.mrf.mxu3 }
  0xcc   :  { %v526_v19 = vpop.f32.mrf.mxu0 }
  0xcd   :  { %v539_v20 = vpop.f32.mrf.mxu1 }
  0xce   :  { %v540_v21 = vadd.f32 %v539_v20, %v526_v19 }
  0xd0   :  { %v571_v23 = vmul.f32 %v540_v21, %v540_v21 }
  0xd2   :  { %v573_v24 = vadd.f32 %v571_v23, %v569_v22 }
  0xd4   :  { %v552_v26 = vpop.f32.mrf.mxu2  ;;  %v528_v27 = vpop.f32.mrf.mxu0  ;;  %956 = vrsqrt.f32 %v573_v24  ;;  %vm582_vm0 = vcmp.eq.f32.partialorder %v573_v24, inf  ;;  %v585_v49 = vand.u32 2147483648, %v573_v24  ;;  %vm584_vm2 = vcmp.eq.f32.partialorder %v573_v24, 0.0 }
  0xd5   :  { %v565_v56 = vpop.f32.mrf.mxu3  ;;  %v541_v28 = vpop.f32.mrf.mxu1 }
  0xd6   :  { %v566_v59 = vadd.f32 %v565_v56, %v552_v26 }
  0xd8   :  { %v572_v30 = vmul.f32 %v566_v59, %v566_v59 }
  0xda   :  { %v574_v31 = vadd.f32 %v572_v30, %v570_v29  ;;  %v957_v32 = vpop.eup %956 }
  0xdb   :  { %v576_v34 = vmul.f32 %v957_v32, %v573_v24 }
  0xdc   :  { %v554_v33 = vpop.f32.mrf.mxu2  ;;  %958 = vrsqrt.f32 %v574_v31  ;;  %vm594_vm1 = vcmp.eq.f32.partialorder %v574_v31, inf  ;;  %v597_v50 = vand.u32 2147483648, %v574_v31  ;;  %vm596_vm3 = vcmp.eq.f32.partialorder %v574_v31, 0.0 }
  0xdd   :  { %v567_v35 = vpop.f32.mrf.mxu3  ;;  %v577_v36 = vmul.f32 %v957_v32, %v576_v34 }
  0xdf   :  { %v578_v37 = vmul.f32 0.5, %v577_v36 }
  0xe1   :  { %v579_v39 = vsub.f32 1.5, %v578_v37 }
  0xe2   :  { %v959_v38 = vpop.eup %958 }
  0xe3   :  { %v588_v40 = vmul.f32 %v959_v38, %v574_v31  ;;  %v580_v41 = vmul.f32 %v957_v32, %v579_v39 }
  0xe5   :  { %v589_v42 = vmul.f32 %v959_v38, %v588_v40  ;;  %v581_v44 = vmul.f32 %v580_v41, %v573_v24 }
  0xe7   :  { %v590_v43 = vmul.f32 0.5, %v589_v42  ;;  %v583_v47 = vsel %vm582_vm0, %v573_v24, %v581_v44 }
  0xe8   :  { %v586_v52 = vsel %vm584_vm2, %v585_v49, %v583_v47 }
  0xe9   :  { %v591_v45 = vsub.f32 1.5, %v590_v43 }
  0xeb   :  { %v592_v46 = vmul.f32 %v959_v38, %v591_v45 }
  0xed   :  { %v593_v48 = vmul.f32 %v592_v46, %v574_v31 }
  0xef   :  { %v595_v51 = vsel %vm594_vm1, %v574_v31, %v593_v48 }
  0xf0   :  { %v598_v53 = vsel %vm596_vm3, %v597_v50, %v595_v51 }
  0xf1   :  { %v599_v54 = vadd.f32 %v598_v53, %v586_v52 }
  0xf3   :  { %600 = vadd.xlane.f32.xlu0 %v599_v54 }
 0x166   :  { %v601_v55 = vpop.xlane.xlu0 %600 }
 0x167   :  { %v602_v57 = vrot.slane %v601_v55, 4 }
 0x169   :  { %v603_v58 = vadd.f32 %v602_v57, %v601_v55 }
 0x16b   :  { %v604_v60 = vrot.slane %v603_v58, 2 }
 0x16d   :  { %v605_v61 = vadd.f32 %v604_v60, %v603_v58 }
 0x16f   :  { %v606_v62 = vrot.slane %v605_v61, 1 }
 0x171   :  { %v607_v63 = vadd.f32 %v606_v62, %v605_v61 }
 0x173   :  { %610 = vst [vmem:[#allocation8] sm:$0xff] %v607_v63 }
 0x174   :  { %621 = dma.vmem_to_hbm [thread:$0]  %s617_s2, 128, %s619_s30, [#allocation4]  }
 0x175   :  { %1060 = dma.done.wait [#allocation4], 128  }
 0x176   :  { %1061 = vsyncadd [#allocation4], 4294967168 }
 0x177   :  { %626 = vsyncpa [#allocation3], 1 }
 0x178   :  { %627 = vsyncpa [#allocation6], 1 }
 0x179   :  { %628 = vsyncpa [#allocation4], 1 }

</bundles_post_ra>
